<compile_context>
chip_gen: v7x
topology: tpu7x:2x2x1
jax: 0.10.0
libtpu: 0.0.40
codegen_flags: <defaults>
</compile_context>

<pallas_src>
import functools

import jax
import jax.numpy as jnp
from jax import lax
from jax.experimental import pallas as pl
from jax.experimental.pallas import tpu as pltpu


def _upsample_conv_kernel(x_ref, w_ref, b_ref, a_ref, o_ref, xp_ref,
                          *col_scratch, H, W, Cin, Cout, fuse_k):
    """Fused 3x3 same-pad conv + bias + PReLU for one batch element.

    x_ref  : (1, Cin, H*W)            lane-dense flattened NCHW input block
    w_ref  : (Cout, 9*Cin)            weights, column = (kh*3+kw)*Cin + ci
    b_ref  : (Cout, 1)                bias
    a_ref  : (1, 1)  [SMEM]           PReLU alpha (single shared parameter)
    o_ref  : (1, Cout, H*W)           conv output (valid columns only)
    xp_ref : (Cin, (H+2)*W + 2)       VMEM scratch: height-padded flat image
    col_scratch: optional (9*Cin, H*W) VMEM scratch (fused small-Cin path only)
    """
    HW = H * W
    col_ref = col_scratch[0] if fuse_k else None

    # ---- Build the height-padded flat image in VMEM -------------------------
    # Zero only the halo (top pad row + lead elem, bottom pad row + trail elem);
    # the interior is fully overwritten by one dense 256-lane store.
    xp_ref[:, :W + 1] = jnp.zeros((Cin, W + 1), xp_ref.dtype)
    xp_ref[:, (H + 1) * W + 1:] = jnp.zeros((Cin, W + 1), xp_ref.dtype)
    xp_ref[:, W + 1:W + 1 + HW] = x_ref[0]

    # Width-boundary masks (the width is NOT padded; the left/right taps are
    # generated by a lane roll and the out-of-image lanes are zeroed here).
    idx = lax.broadcasted_iota(jnp.int32, (Cin, HW), 1)
    wpos = idx % W
    left_keep = wpos != 0            # kw=0 tap invalid where w == 0
    right_keep = wpos != (W - 1)     # kw=2 tap invalid where w == W-1

    def make_taps(kh):
        # Centre tap (kh, kw=1) for output q = h*W + w is xp[:, q + kh*W + 1].
        base = kh * W + 1
        center = xp_ref[:, base:base + HW]
        # Left/right taps are +/-1 lane shifts of the centre slab (XLU roll),
        # with the row-wrap lanes masked to the zero padding value.
        left = jnp.where(left_keep, pltpu.roll(center, 1, axis=1), 0.0)
        right = jnp.where(right_keep, pltpu.roll(center, HW - 1, axis=1), 0.0)
        return left, center, right

    if fuse_k:
        # Small Cin: fuse all 9 taps into one MXU matmul with K = 9*Cin.
        for kh in range(3):
            left, center, right = make_taps(kh)
            col_ref[(kh * 3 + 0) * Cin:(kh * 3 + 1) * Cin, :] = left
            col_ref[(kh * 3 + 1) * Cin:(kh * 3 + 2) * Cin, :] = center
            col_ref[(kh * 3 + 2) * Cin:(kh * 3 + 3) * Cin, :] = right
        acc = jnp.dot(w_ref[...], col_ref[...],
                      preferred_element_type=jnp.float32)
    else:
        # Large Cin: skip the 9x-image col scratch entirely; 9 accumulating
        # matmuls read the shifted slabs directly (K = Cin is deep enough).
        acc = jnp.zeros((Cout, HW), jnp.float32)
        for kh in range(3):
            taps = make_taps(kh)
            for kw in range(3):
                t = kh * 3 + kw
                acc = acc + jnp.dot(w_ref[:, t * Cin:(t + 1) * Cin], taps[kw],
                                    preferred_element_type=jnp.float32)

    acc = acc + b_ref[...]                              # (Cout, 1) broadcast
    alpha = a_ref[0, 0]                                 # scalar from SMEM
    acc = jnp.where(acc >= 0.0, acc, alpha * acc)       # PReLU (1 parameter)
    o_ref[0] = acc.astype(o_ref.dtype)                  # lane-dense store


def upsample_block(x_nchw, weight, bias, alpha, up_scale):
    """Forward pass of UpsampleBlock.

    x_nchw : (N, Cin, H, W)        float32
    weight : (Cout, Cin, 3, 3)     torch-layout conv weight, Cout = Cin*r*r
    bias   : (Cout,)
    alpha  : scalar PReLU parameter (nn.PReLU default: single parameter)
    returns: (N, Cin, H*r, W*r)    float32, NCHW, torch-compatible
    """
    N, Cin, H, W = x_nchw.shape
    r = up_scale
    Cout = Cin * r * r
    assert weight.shape == (Cout, Cin, 3, 3)
    HW = H * W

    # Free, row-major-contiguous reshape: lane-dense (256-wide) input blocks.
    x_flat = x_nchw.reshape(N, Cin, HW).astype(jnp.float32)

    # Pack weights once: (Cout, Cin, 3, 3) -> (Cout, 9*Cin), col = (kh*3+kw)*Cin+ci.
    w_mat = jnp.transpose(weight, (0, 2, 3, 1)).reshape(Cout, 9 * Cin)
    w_mat = w_mat.astype(jnp.float32)
    bias2d = bias.reshape(Cout, 1).astype(jnp.float32)
    alpha2d = jnp.asarray(alpha, jnp.float32).reshape(1, 1)

    fuse_k = Cin < 32   # fused K=9*Cin matmul for tiny Cin, 9 acc-matmuls otherwise
    scratch_shapes = [pltpu.VMEM((Cin, (H + 2) * W + 2), jnp.float32)]
    if fuse_k:
        scratch_shapes.append(pltpu.VMEM((9 * Cin, HW), jnp.float32))

    kernel = functools.partial(_upsample_conv_kernel,
                               H=H, W=W, Cin=Cin, Cout=Cout, fuse_k=fuse_k)

    y = pl.pallas_call(
        kernel,
        out_shape=jax.ShapeDtypeStruct((N, Cout, HW), jnp.float32),
        grid_spec=pltpu.PrefetchScalarGridSpec(
            num_scalar_prefetch=0,
            grid=(N,),
            in_specs=[
                pl.BlockSpec((1, Cin, HW), lambda n: (n, 0, 0)),        # input, lane-dense
                pl.BlockSpec((Cout, 9 * Cin), lambda n: (0, 0)),        # packed weights
                pl.BlockSpec((Cout, 1), lambda n: (0, 0)),              # bias
                pl.BlockSpec(memory_space=pltpu.MemorySpace.SMEM),      # alpha scalar
            ],
            out_specs=pl.BlockSpec((1, Cout, HW), lambda n: (n, 0, 0)),
            scratch_shapes=scratch_shapes,
        ),
        compiler_params=pltpu.CompilerParams(
            dimension_semantics=("parallel",)),
    )(x_flat, w_mat, bias2d, alpha2d)

    # Pixel shuffle: one fused XLA reshape+transpose pass (no junk columns to drop).
    y = y.reshape(N, Cin, r, r, H, W)                # (N, Cin, rh, rw, H, W)
    y = jnp.transpose(y, (0, 1, 4, 2, 5, 3))         # (N, Cin, H, rh, W, rw)
    return y.reshape(N, Cin, H * r, W * r)


def _reference(x_nchw, weight, bias, alpha, up_scale):
    """Pure-JAX reference (lax conv + pixel shuffle + prelu) for verification."""
    N, Cin, H, W = x_nchw.shape
    r = up_scale
    Cout = Cin * r * r
    y = lax.conv_general_dilated(
        x_nchw, weight, window_strides=(1, 1), padding=((1, 1), (1, 1)),
        dimension_numbers=("NCHW", "OIHW", "NCHW"))
    y = y + bias.reshape(1, Cout, 1, 1)
    y = y.reshape(N, Cin, r, r, H, W)
    y = jnp.transpose(y, (0, 1, 4, 2, 5, 3)).reshape(N, Cin, H * r, W * r)
    return jnp.where(y >= 0, y, alpha * y)


if __name__ == "__main__":
    key = jax.random.PRNGKey(0)
    N, Cin, H, W = 2, 4, 16, 16
    up_scale = 2
    Cout = Cin * up_scale ** 2

    k_x, k_w, k_b = jax.random.split(key, 3)
    x = jax.random.normal(k_x, (N, Cin, H, W), dtype=jnp.float32)
    # Deterministic synthetic parameters (Conv2d weight/bias + PReLU alpha).
    fan_in = Cin * 3 * 3
    bound = 1.0 / (fan_in ** 0.5)
    weight = jax.random.uniform(k_w, (Cout, Cin, 3, 3), jnp.float32, -bound, bound)
    bias = jax.random.uniform(k_b, (Cout,), jnp.float32, -bound, bound)
    alpha = jnp.float32(0.25)  # nn.PReLU default init

    out = upsample_block(x, weight, bias, alpha, up_scale)
    out = jax.block_until_ready(out)

    ref = _reference(x, weight, bias, alpha, up_scale)
    assert out.shape == (N, Cin, H * up_scale, W * up_scale)
    assert jnp.allclose(out, ref, atol=1e-4, rtol=1e-4), \
        float(jnp.max(jnp.abs(out - ref)))

    print("KERNEL_OK")
</pallas_src>

<mosaic_0001>
module attributes {stable_mosaic.version = 11 : i64} {
  func.func @_upsample_conv_kernel(%arg0: i32, %arg1: memref<1x4x256xf32, #tpu.memory_space<vmem>>, %arg2: memref<16x36xf32, #tpu.memory_space<vmem>>, %arg3: memref<16x1xf32, #tpu.memory_space<vmem>>, %arg4: memref<1x1xf32, #tpu.memory_space<smem>>, %arg5: memref<1x16x256xf32, #tpu.memory_space<vmem>>, %arg6: memref<4x290xf32, #tpu.memory_space<vmem>>, %arg7: memref<36x256xf32, #tpu.memory_space<vmem>>) attributes {dimension_semantics = [#tpu.dimension_semantics<parallel>], iteration_bounds = array<i64: 2>, scalar_prefetch = 0 : i64, scratch_operands = 2 : i64, tpu.core_type = #tpu.core_type<tc>, window_params = [{transform_indices = @transform_0, window_bounds = array<i64: 1, 4, 256>}, {pipeline_mode = #tpu.pipeline_mode<synchronous>, transform_indices = @transform_1, window_bounds = array<i64: 16, 36>}, {pipeline_mode = #tpu.pipeline_mode<synchronous>, transform_indices = @transform_2, window_bounds = array<i64: 16, 1>}, {transform_indices = @transform_3, window_bounds = array<i64: 1, 1>}, {transform_indices = @transform_4, window_bounds = array<i64: 1, 16, 256>}]} {
    %cst = arith.constant 0.000000e+00 : f32
    %0 = vector.broadcast %cst : f32 to vector<4x17xf32>
    %c0 = arith.constant 0 : index
    %c0_0 = arith.constant 0 : index
    %1 = vector.load %arg6[%c0, %c0_0] : memref<4x290xf32, #tpu.memory_space<vmem>>, vector<4x17xf32>
    tpu.vector_store %arg6[%c0, %c0_0], %0 {strides = array<i32>} : memref<4x290xf32, #tpu.memory_space<vmem>>, vector<4x17xf32>,
    %cst_1 = arith.constant 0.000000e+00 : f32
    %2 = vector.broadcast %cst_1 : f32 to vector<4x17xf32>
    %c0_2 = arith.constant 0 : index
    %c273 = arith.constant 273 : index
    %3 = vector.load %arg6[%c0_2, %c273] : memref<4x290xf32, #tpu.memory_space<vmem>>, vector<4x17xf32>
    tpu.vector_store %arg6[%c0_2, %c273], %2 {strides = array<i32>} : memref<4x290xf32, #tpu.memory_space<vmem>>, vector<4x17xf32>,
    %c0_3 = arith.constant 0 : index
    %c0_4 = arith.constant 0 : index
    %c0_5 = arith.constant 0 : index
    %4 = vector.load %arg1[%c0_3, %c0_4, %c0_5] : memref<1x4x256xf32, #tpu.memory_space<vmem>>, vector<1x4x256xf32>
    %5 = vector.shape_cast %4 : vector<1x4x256xf32> to vector<4x256xf32>
    %c0_6 = arith.constant 0 : index
    %c17 = arith.constant 17 : index
    %6 = vector.load %arg6[%c0_6, %c17] : memref<4x290xf32, #tpu.memory_space<vmem>>, vector<4x256xf32>
    tpu.vector_store %arg6[%c0_6, %c17], %5 {strides = array<i32>} : memref<4x290xf32, #tpu.memory_space<vmem>>, vector<4x256xf32>,
    %7 = tpu.iota {dimensions = array<i32: 1>} : vector<4x256xi32>
    %c16_i32 = arith.constant 16 : i32
    %c0_i32 = arith.constant 0 : i32
    %8 = arith.cmpi eq, %c16_i32, %c0_i32 : i32
    %c1_i32 = arith.constant 1 : i32
    %9 = arith.select %8, %c1_i32, %c16_i32 : i32
    %10 = vector.broadcast %9 : i32 to vector<4x256xi32>
    %11 = arith.remsi %7, %10 : vector<4x256xi32>
    %c0_i32_7 = arith.constant 0 : i32
    %12 = vector.broadcast %c0_i32_7 : i32 to vector<4x256xi32>
    %13 = arith.cmpi ne, %11, %12 : vector<4x256xi32>
    %c0_i32_8 = arith.constant 0 : i32
    %14 = vector.broadcast %c0_i32_8 : i32 to vector<4x256xi32>
    %15 = arith.cmpi slt, %11, %14 : vector<4x256xi32>
    %c0_i32_9 = arith.constant 0 : i32
    %16 = arith.cmpi slt, %9, %c0_i32_9 : i32
    %17 = vector.broadcast %16 : i1 to vector<4x256xi1>
    %18 = vector.broadcast %17 : vector<4x256xi1> to vector<4x256xi1>
    %19 = arith.xori %15, %18 : vector<4x256xi1>
    %20 = arith.andi %19, %13 : vector<4x256xi1>
    %21 = vector.broadcast %9 : i32 to vector<4x256xi32>
    %22 = arith.addi %11, %21 : vector<4x256xi32>
    %23 = arith.select %20, %22, %11 : vector<4x256xi1>, vector<4x256xi32>
    %c0_i32_10 = arith.constant 0 : i32
    %24 = vector.broadcast %c0_i32_10 : i32 to vector<4x256xi32>
    %25 = arith.cmpi ne, %23, %24 : vector<4x256xi32>
    %c15_i32 = arith.constant 15 : i32
    %26 = vector.broadcast %c15_i32 : i32 to vector<4x256xi32>
    %27 = arith.cmpi ne, %23, %26 : vector<4x256xi32>
    %c0_11 = arith.constant 0 : index
    %c1 = arith.constant 1 : index
    %28 = vector.load %arg6[%c0_11, %c1] : memref<4x290xf32, #tpu.memory_space<vmem>>, vector<4x256xf32>
    %c1_i32_12 = arith.constant 1 : i32
    %29 = tpu.dynamic_rotate %28 by %c1_i32_12 dim 1 : vector<4x256xf32>, i32 -> vector<4x256xf32>
    %cst_13 = arith.constant 0.000000e+00 : f32
    %30 = vector.broadcast %cst_13 : f32 to vector<4x256xf32>
    %31 = arith.select %25, %29, %30 : vector<4x256xi1>, vector<4x256xf32>
    %c255_i32 = arith.constant 255 : i32
    %32 = tpu.dynamic_rotate %28 by %c255_i32 dim 1 : vector<4x256xf32>, i32 -> vector<4x256xf32>
    %cst_14 = arith.constant 0.000000e+00 : f32
    %33 = vector.broadcast %cst_14 : f32 to vector<4x256xf32>
    %34 = arith.select %27, %32, %33 : vector<4x256xi1>, vector<4x256xf32>
    %c0_15 = arith.constant 0 : index
    %c0_16 = arith.constant 0 : index
    %35 = vector.load %arg7[%c0_15, %c0_16] : memref<36x256xf32, #tpu.memory_space<vmem>>, vector<4x256xf32>
    tpu.vector_store %arg7[%c0_15, %c0_16], %31 {strides = array<i32>} : memref<36x256xf32, #tpu.memory_space<vmem>>, vector<4x256xf32>,
    %c4 = arith.constant 4 : index
    %c0_17 = arith.constant 0 : index
    %36 = vector.load %arg7[%c4, %c0_17] : memref<36x256xf32, #tpu.memory_space<vmem>>, vector<4x256xf32>
    tpu.vector_store %arg7[%c4, %c0_17], %28 {strides = array<i32>} : memref<36x256xf32, #tpu.memory_space<vmem>>, vector<4x256xf32>,
    %c8 = arith.constant 8 : index
    %c0_18 = arith.constant 0 : index
    %37 = vector.load %arg7[%c8, %c0_18] : memref<36x256xf32, #tpu.memory_space<vmem>>, vector<4x256xf32>
    tpu.vector_store %arg7[%c8, %c0_18], %34 {strides = array<i32>} : memref<36x256xf32, #tpu.memory_space<vmem>>, vector<4x256xf32>,
    %c0_19 = arith.constant 0 : index
    %c17_20 = arith.constant 17 : index
    %38 = vector.load %arg6[%c0_19, %c17_20] : memref<4x290xf32, #tpu.memory_space<vmem>>, vector<4x256xf32>
    %c1_i32_21 = arith.constant 1 : i32
    %39 = tpu.dynamic_rotate %38 by %c1_i32_21 dim 1 : vector<4x256xf32>, i32 -> vector<4x256xf32>
    %cst_22 = arith.constant 0.000000e+00 : f32
    %40 = vector.broadcast %cst_22 : f32 to vector<4x256xf32>
    %41 = arith.select %25, %39, %40 : vector<4x256xi1>, vector<4x256xf32>
    %c255_i32_23 = arith.constant 255 : i32
    %42 = tpu.dynamic_rotate %38 by %c255_i32_23 dim 1 : vector<4x256xf32>, i32 -> vector<4x256xf32>
    %cst_24 = arith.constant 0.000000e+00 : f32
    %43 = vector.broadcast %cst_24 : f32 to vector<4x256xf32>
    %44 = arith.select %27, %42, %43 : vector<4x256xi1>, vector<4x256xf32>
    %c12 = arith.constant 12 : index
    %c0_25 = arith.constant 0 : index
    %45 = vector.load %arg7[%c12, %c0_25] : memref<36x256xf32, #tpu.memory_space<vmem>>, vector<4x256xf32>
    tpu.vector_store %arg7[%c12, %c0_25], %41 {strides = array<i32>} : memref<36x256xf32, #tpu.memory_space<vmem>>, vector<4x256xf32>,
    %c16 = arith.constant 16 : index
    %c0_26 = arith.constant 0 : index
    %46 = vector.load %arg7[%c16, %c0_26] : memref<36x256xf32, #tpu.memory_space<vmem>>, vector<4x256xf32>
    tpu.vector_store %arg7[%c16, %c0_26], %38 {strides = array<i32>} : memref<36x256xf32, #tpu.memory_space<vmem>>, vector<4x256xf32>,
    %c20 = arith.constant 20 : index
    %c0_27 = arith.constant 0 : index
    %47 = vector.load %arg7[%c20, %c0_27] : memref<36x256xf32, #tpu.memory_space<vmem>>, vector<4x256xf32>
    tpu.vector_store %arg7[%c20, %c0_27], %44 {strides = array<i32>} : memref<36x256xf32, #tpu.memory_space<vmem>>, vector<4x256xf32>,
    %c0_28 = arith.constant 0 : index
    %c33 = arith.constant 33 : index
    %48 = vector.load %arg6[%c0_28, %c33] : memref<4x290xf32, #tpu.memory_space<vmem>>, vector<4x256xf32>
    %c1_i32_29 = arith.constant 1 : i32
    %49 = tpu.dynamic_rotate %48 by %c1_i32_29 dim 1 : vector<4x256xf32>, i32 -> vector<4x256xf32>
    %cst_30 = arith.constant 0.000000e+00 : f32
    %50 = vector.broadcast %cst_30 : f32 to vector<4x256xf32>
    %51 = arith.select %25, %49, %50 : vector<4x256xi1>, vector<4x256xf32>
    %c255_i32_31 = arith.constant 255 : i32
    %52 = tpu.dynamic_rotate %48 by %c255_i32_31 dim 1 : vector<4x256xf32>, i32 -> vector<4x256xf32>
    %cst_32 = arith.constant 0.000000e+00 : f32
    %53 = vector.broadcast %cst_32 : f32 to vector<4x256xf32>
    %54 = arith.select %27, %52, %53 : vector<4x256xi1>, vector<4x256xf32>
    %c24 = arith.constant 24 : index
    %c0_33 = arith.constant 0 : index
    %55 = vector.load %arg7[%c24, %c0_33] : memref<36x256xf32, #tpu.memory_space<vmem>>, vector<4x256xf32>
    tpu.vector_store %arg7[%c24, %c0_33], %51 {strides = array<i32>} : memref<36x256xf32, #tpu.memory_space<vmem>>, vector<4x256xf32>,
    %c28 = arith.constant 28 : index
    %c0_34 = arith.constant 0 : index
    %56 = vector.load %arg7[%c28, %c0_34] : memref<36x256xf32, #tpu.memory_space<vmem>>, vector<4x256xf32>
    tpu.vector_store %arg7[%c28, %c0_34], %48 {strides = array<i32>} : memref<36x256xf32, #tpu.memory_space<vmem>>, vector<4x256xf32>,
    %c32 = arith.constant 32 : index
    %c0_35 = arith.constant 0 : index
    %57 = vector.load %arg7[%c32, %c0_35] : memref<36x256xf32, #tpu.memory_space<vmem>>, vector<4x256xf32>
    tpu.vector_store %arg7[%c32, %c0_35], %54 {strides = array<i32>} : memref<36x256xf32, #tpu.memory_space<vmem>>, vector<4x256xf32>,
    %c0_36 = arith.constant 0 : index
    %c0_37 = arith.constant 0 : index
    %58 = vector.load %arg2[%c0_36, %c0_37] : memref<16x36xf32, #tpu.memory_space<vmem>>, vector<16x36xf32>
    %c0_38 = arith.constant 0 : index
    %c0_39 = arith.constant 0 : index
    %59 = vector.load %arg7[%c0_38, %c0_39] : memref<36x256xf32, #tpu.memory_space<vmem>>, vector<36x256xf32>
    %cst_40 = arith.constant dense<0.000000e+00> : vector<16x256xf32>
    %60 = tpu.matmul %58, %59, %cst_40 {dimension_numbers = #tpu.dot_dimension_numbers<[1], [0], [0], [1], [0, 0, 1, 1], [], []>} : vector<16x36xf32>, vector<36x256xf32>, vector<16x256xf32> -> vector<16x256xf32>
    %c0_41 = arith.constant 0 : index
    %c0_42 = arith.constant 0 : index
    %61 = vector.load %arg3[%c0_41, %c0_42] : memref<16x1xf32, #tpu.memory_space<vmem>>, vector<16x1xf32>
    %62 = vector.broadcast %61 : vector<16x1xf32> to vector<16x256xf32>
    %63 = arith.addf %60, %62 : vector<16x256xf32>
    %c0_43 = arith.constant 0 : index
    %c0_44 = arith.constant 0 : index
    %64 = memref.load %arg4[%c0_43, %c0_44] : memref<1x1xf32, #tpu.memory_space<smem>>
    %cst_45 = arith.constant 0.000000e+00 : f32
    %65 = vector.broadcast %cst_45 : f32 to vector<16x256xf32>
    %66 = arith.cmpf oge, %63, %65 : vector<16x256xf32>
    %67 = vector.broadcast %64 : f32 to vector<16x256xf32>
    %68 = arith.mulf %67, %63 : vector<16x256xf32>
    %69 = arith.select %66, %63, %68 : vector<16x256xi1>, vector<16x256xf32>
    %c0_46 = arith.constant 0 : index
    %c0_47 = arith.constant 0 : index
    %c0_48 = arith.constant 0 : index
    %70 = vector.load %arg5[%c0_46, %c0_47, %c0_48] : memref<1x16x256xf32, #tpu.memory_space<vmem>>, vector<1x16x256xf32>
    %71 = vector.shape_cast %70 : vector<1x16x256xf32> to vector<16x256xf32>
    %72 = vector.shape_cast %69 : vector<16x256xf32> to vector<1x16x256xf32>
    tpu.vector_store %arg5[%c0_46, %c0_47, %c0_48], %72 {strides = array<i32>} : memref<1x16x256xf32, #tpu.memory_space<vmem>>, vector<1x16x256xf32>,
    return
  }
  func.func @transform_0(%arg0: i32) -> (i32, i32, i32) {
    %c0_i32 = arith.constant 0 : i32
    %c0_i32_0 = arith.constant 0 : i32
    %c0_i32_1 = arith.constant 0 : i32
    return %arg0, %c0_i32, %c0_i32_0 : i32, i32, i32
  }
  func.func @transform_1(%arg0: i32) -> (i32, i32) {
    %c0_i32 = arith.constant 0 : i32
    %c0_i32_0 = arith.constant 0 : i32
    %c0_i32_1 = arith.constant 0 : i32
    return %c0_i32, %c0_i32_0 : i32, i32
  }
  func.func @transform_2(%arg0: i32) -> (i32, i32) {
    %c0_i32 = arith.constant 0 : i32
    %c0_i32_0 = arith.constant 0 : i32
    %c0_i32_1 = arith.constant 0 : i32
    return %c0_i32, %c0_i32_0 : i32, i32
  }
  func.func @transform_3(%arg0: i32) -> (i32, i32) {
    %c0_i32 = arith.constant 0 : i32
    %c0_i32_0 = arith.constant 0 : i32
    %c0_i32_1 = arith.constant 0 : i32
    return %c0_i32, %c0_i32_0 : i32, i32
  }
  func.func @transform_4(%arg0: i32) -> (i32, i32, i32) {
    %c0_i32 = arith.constant 0 : i32
    %c0_i32_0 = arith.constant 0 : i32
    %c0_i32_1 = arith.constant 0 : i32
    return %arg0, %c0_i32, %c0_i32_0 : i32, i32, i32
  }
}

</mosaic_0001>

<bundles_post_ra>
// kernel: tpu_custom_call.1
= control target key start
LH: loop header
LB: loop body
LE: loop exit
PB: predicated region body
PF: predicated region fallthrough
CT: control target
= control target key end

     0   :  { %s1113_s0 = inlined_call_operand.vmem [shape: f32[2,4,256], index: 0, kind: input, shape index: {}]   ;;  %s1114_s1 = inlined_call_operand.hbm [shape: f32[16,36], index: 1, kind: input, shape index: {}]   ;;  %s1115_s2 = inlined_call_operand.vmem [shape: f32[16,1], index: 2, kind: input, shape index: {}]   ;;  %s1116_s3 = inlined_call_operand.<no memory space> [shape: f32[1,1], index: 3, kind: input, shape index: {}]   ;;  %s1117_s4 = inlined_call_operand.hbm [shape: f32[2,16,256], index: 4, kind: output, shape index: {}]  }
   0x1   :  { %9 = sst [smem:[#allocation4]] %s1116_s3 }
   0x2   :  { %10 = vsyncpa [#allocation6], 0 }
   0x3   :  { %11 = vsyncpa [#allocation7], 0 }
   0x4   :  { %13 = vsyncpa [#allocation7 + $0x1], 0  ;;  %s868_s17 = smov 0   ;;  %s870_s18 = smov 0  }
   0x5   :  { %s872_s19 = smov 0   ;;  %s874_s20 = smov 0  }
   0x6 LB: > { %s889_s3 = sadd.s32 4294967295, %s825_s20   ;;  %s630_s21 = sadd.s32 4294967294, %s825_s20   ;;  %s825_s20 = sphi %s874_s20, %s1141_s20   ;;  %s821_s19 = sphi %s872_s19, %s1140_s19   ;;  %s817_s18 = sphi %s870_s18, %s1139_s18   ;;  %s813_s17 = sphi %s868_s17, %s1138_s17  }
   0x7   : > { %s893_s22 = sadd.s32 1, %s825_s20   ;;  %s115_s23 = sadd.s32 1, %s821_s19 }
   0x8   : > { %s112_s24 = ssub.s32 %s825_s20, %s893_s22  ;;  %p125_p0 = scmp.ne.s32.totalorder %s821_s19, %s817_s18 }
   0x9   : > { %p113_p1 = scmp.eq.s32.totalorder %s112_s24, 0  ;;  %p126_p2 = scmp.eq.s32.totalorder %s889_s3, 1 }
   0xa   : > { %p131_p3 = scmp.ne.s32.totalorder %s817_s18, %s813_s17  ;;  %p132_p4 = scmp.eq.s32.totalorder %s630_s21, 1 }
   0xb   : > { %s904_s25 = scalar_select %p113_p1, %s821_s19, %s115_s23  }
   0xc   : > { %p906_p5 = por %p126_p2, %p125_p0  ;;  %p910_p6 = por %p132_p4, %p131_p3 }
   0xd   : > { %p631_p7 = scmp.ge.s32.totalorder %s825_s20, 1  ;;  %p139_p8 = scmp.lt.s32.totalorder %s825_s20, 3 }
   0xe   : > { %s1121_s26 = scalar_select %p906_p5, 1, 0 }
   0xf   : > { %s1122_s27 = scalar_select %p910_p6, 1, 0 }
  0x10   : > { %p1118_p9 = scmp.eq.s32.totalorder %s889_s3, 0  ;;  %p917_p10 = pnand %p631_p7, %p139_p8 }
  0x11   : > { %s827_s29 = smov [#allocation5]   ;;  %s731_s8 = scalar_lea.hbm %s1114_s1, 256 }
  0x12   : > { %s1123_s28 = scalar_select %p917_p10, 1, 0 }
  0x13   : > { %s151_s30 = sshll.u32 %s827_s29, 4  ;;  %p670_p11 = pneg %p917_p10  ;;  %s152_s30 = int_to_ptr.vmem [resolvable:$true] %s151_s30 }
  0x14   : > { %p732_p13 = scmp.ne.s32.totalorder %s1114_s1, %s731_s8  ;;  %p738_p3 = scmp.lt.u32.totalorder %s731_s8, %s1114_s1 }
  0x15   : > { %p925_p12 = pnand %p1118_p9, %p670_p11 }
  0x17   : > { %p733_p0 = pneg %p925_p12 }
  0x19   : > { %p734_p1 = pnand %p733_p0, %p732_p13 }
  0x1b   : > { %p735_p2 = pneg %p734_p1 }
  0x1d   : > { %p740_p4 = pnand %p738_p3, %p735_p2 }
  0x1f   : > { %743 = shalt.err (!%p740_p4)
}
  0x20   : > { %s744_s13 = scalar_lea.vmem %s152_s30, 256  ;;  %p752_p9 = scmp.lt.s32.totalorder %s152_s30, %s152_s30 }
  0x21   : > { %p745_p7 = scmp.ne.s32.totalorder %s152_s30, %s744_s13  ;;  %p753_p6 = scmp.lt.s32.totalorder %s744_s13, %s744_s13 }
  0x23   : > { %p747_p8 = pnand %p745_p7, %p733_p0  ;;  %p754_p5 = por %p753_p6, %p752_p9 }
  0x25   : > { %p748_p11 = pneg %p747_p8 }
  0x27   : > { %p755_p10 = pnand %p754_p5, %p748_p11 }
  0x29   : > { %758 = shalt.err (!%p755_p10)
}
  0x2a   : > { %s828_s14 = smov 128   ;;  %s829_s15 = smov 8  }
  0x2b   : > { %673 = dma.hbm_to_vmem [thread:$0]  (!%p925_p12), %s1114_s1, 256, %s152_s30, [#allocation6], %s828_s14, %s828_s14, %s829_s15  }
  0x2c   : > { %p1125_p13 = scmp.ne.s32.totalorder %s1123_s28, 0 }
  0x2d   : > { %p1126_p1 = scmp.eq.s32.totalorder (!%p1125_p13), %s889_s3, 0 }
  0x2e   : > { %181 = sbr.rel (%p1125_p13) target bundleno = 695 (0x2b7), region = 36 }
  0x35   : > { %804 = dma.done.wait (%p1126_p1), [#allocation6], 256   ;;  %p1127_p0 = pmov %p1126_p1 }
  0x36   : > { %p207_p5 = scmp.lt.s32.totalorder %s889_s3, 1  ;;  %vm212_vm0 = vcmask 134144   ;;  %vm214_vm1 = vcmask 273544   ;;  %v830_v0 = vmov 0.0   ;;  %s831_s5 = smov 17   ;;  %vm225_vm2 = vcmask 1043592  }
  0x37   : > { %806 = vsyncadd (%p1127_p0), [#allocation6], 4294967040  ;;  %213 = vst.msk [vmem:[#allocation2] sm:$0xf] %vm212_vm0, %v830_v0  ;;  %511 = vmatprep.mubr.f32.mxu0 %v830_v0  ;;  %517 = vmatprep.mubr.f32.mxu1 %v830_v0  ;;  %vm226_vm3 = vcmask 1047556   ;;  %vm221_vm4 = vcmask 138240   ;;  %v230_v35 = vlaneseq }
  0x38   : > { %s208_s23 = scalar_select %p207_p5, %s889_s3, 1  ;;  %215 = vst.msk [vmem:[#allocation2 + $0x8] sm:$0xf] %vm214_vm1, %v830_v0  ;;  %vm227_vm5 = vmor %vm226_vm3, %vm225_vm2  ;;  %vm322_vm6 = vcmask 908288   ;;  %vm272_vm7 = vcmask 1039360   ;;  %vm372_vm8 = vcmask 777216  }
  0x39   : > { %s832_s6 = smov 111   ;;  %s833_s7 = smov 127   ;;  %v836_v32 = vmov 0   ;;  %v421_v33 = vld [vmem:[%s1115_s2] sm:$0xff]  ;;  %v422_v34 = vld [vmem:[%s1115_s2 + $0x8] sm:$0xff]  ;;  %v985_v36 = vand.u32 127, %v230_v35 }
  0x3a   : > { %s648_s24 = sshll.u32 %s208_s23, 3  ;;  %s834_s8 = smov 95   ;;  %726 = vset.pattern.permute.xlu1 %v836_v32  ;;  %725 = vset.pattern.permute.xlu0 %v836_v32  ;;  %vm440_vm15 = vcmask 1043456  }
  0x3b   : > { %s211_s30 = scalar_lea.vmem %s1113_s0, %s648_s24  ;;  %s835_s9 = smov 1   ;;  %v232_v37 = vadd.s32 128, %v985_v36  ;;  %v237_v38 = vand.u32 15, %v985_v36  ;;  %vm281_vm9 = vcmp.lt.s32.totalorder %v985_v36, 1  ;;  %vm290_vm12 = vcmp.lt.s32.totalorder %v985_v36, 127 }
  0x3c   : > { %v216_v1 = vld [vmem:[%s211_s30] sm:$0xff]  ;;  %s204_s14 = sand.u32 1, %s817_s18   ;;  %s524_s15 = sld [smem:[#allocation4]] }
  0x3d   : > { %218 = vrot.lane.b32.xlu0 %v216_v1, %s831_s5  ;;  %v244_v39 = vand.u32 15, %v232_v37  ;;  %vm990_vm10 = vcmp.ne.s32.totalorder %v237_v38, 0  ;;  %vm1015_vm13 = vcmp.ne.s32.totalorder %v237_v38, 15  ;;  %v409_v37 = vld [vmem:[#allocation5] sm:$0xff]  ;;  %v410_v38 = vld [vmem:[#allocation5 + $0x8] sm:$0xff]  ;;  %s636_s16 = sshll.u32 %s204_s14, 5 }
  0x3e   : > { %s206_s21 = scalar_lea.vmem [#allocation8], %s636_s16  ;;  %s649_s24 = sshll.u32 %s889_s3, 9 }
  0x3f   : > { %vm994_vm11 = vcmp.ne.s32.totalorder %v244_v39, 0  ;;  %vm1019_vm14 = vcmp.ne.s32.totalorder %v244_v39, 15  ;;  %s556_s23 = sshll.u32 %s206_s21, 4  ;;  %s1068_s3 = scalar_lea.hbm %s1117_s4, %s649_s24  ;;  %s1063_s23 = int_to_ptr.vmem [resolvable:$true] %s556_s23 }
  0x40   : > { %s1072_s30 = scalar_lea.sflag [#allocation7], %s204_s14  ;;  %s759_s5 = scalar_lea.vmem %s1063_s23, 512 }
  0x41   : > { %p760_p6 = scmp.ne.s32.totalorder %s1063_s23, %s759_s5  ;;  %p1136_p9 = scmp.ne.s32.totalorder %s1121_s26, 0 }
  0x43   : > { %p761_p10 = pnand %p760_p6, %p1136_p9 }
  0x45   : > { %p762_p12 = pneg %p761_p10 }
  0xaf   : > { %v219_v2 = vpop.permute.xlu0 %218 }
  0xb0   : > { %v220_v3 = vrot.slane %v219_v2, 4 }
  0xb2   : > { %v222_v4 = vsel %vm221_vm4, %v220_v3, %v219_v2  ;;  %229 = vst.msk [vmem:[#allocation2 + $0x8] sm:$0xf] %vm212_vm0, %v220_v3  ;;  %vm433_vm0 = vcmask 293888  }
  0xb3   : > { %228 = vst.msk [vmem:[#allocation2] sm:$0xff] %vm227_vm5, %v222_v4 }
  0xb9   : > { %v312_v5 = vld [vmem:[#allocation2 + $0x8] sm:$0xf] }
  0xba   : > { %v262_v6 = vld [vmem:[#allocation2 + $0x8] sm:$0xf]  ;;  %320 = vrot.lane.b32.xlu1 %v312_v5, %s832_s6  ;;  %v361_v7 = vld [vmem:[#allocation2] sm:$0xff] }
  0xbb   : > { %270 = vrot.lane.b32.xlu0 %v262_v6, %s833_s7  ;;  %v315_v8 = vcombine.high %v361_v7, %v361_v7  ;;  %v298_v9 = vcombine.low %v262_v6, %v262_v6  ;;  %v362_v10 = vld [vmem:[#allocation2 + $0x8] sm:$0xf]  ;;  %v297_v11 = vcombine.low %v361_v7, %v361_v7 }
  0xbc   : > { %v396_v31 = vcombine.low %v362_v10, %v362_v10 }
  0xbe   : > { %366 = vrot.lane.b32.xlu1 %v361_v7, %s834_s8 }
  0xbf   : > { %316 = vrot.lane.b32.xlu0 %v361_v7, %s832_s6 }
  0xc2   : > { %318 = vrot.lane.b32.xlu1 %v315_v8, %s832_s6  ;;  %s837_s6 = smov [#allocation8]  }
  0xc3   : > { %266 = vrot.lane.b32.xlu0 %v361_v7, %s833_s7 }
  0xc6   : > { %268 = vrot.lane.b32.xlu1 %v315_v8, %s833_s7 }
  0xc7   : > { %368 = vrot.lane.b32.xlu0 %v315_v8, %s834_s8 }
  0xca   : > { %370 = vrot.lane.b32.xlu1 %v362_v10, %s834_s8 }
  0xcb   : > { %301 = vrot.lane.b32.xlu0 %v298_v9, %s833_s7 }
  0xce   : > { %299 = vrot.lane.b32.xlu1 %v297_v11, %s833_s7 }
 0x12c   : > { %v321_v12 = vpop.permute.xlu1 %320 }
 0x12d   : > { %v271_v13 = vpop.permute.xlu0 %270 }
 0x130   : > { %v966_v14 = vpop.permute.xlu1 %366 }
 0x131   : > { %v317_v15 = vpop.permute.xlu0 %316 }
 0x134   : > { %v319_v16 = vpop.permute.xlu1 %318 }
 0x135   : > { %v267_v17 = vpop.permute.xlu0 %266  ;;  %v323_v18 = vsel %vm322_vm6, %v317_v15, %v319_v16  ;;  %v324_v19 = vsel %vm322_vm6, %v319_v16, %v321_v12 }
 0x136   : > { %351 = vst [vmem:[#allocation3 + $0x20] sm:$0xf] %v323_v18  ;;  %327 = vrot.lane.b32.xlu0 %v323_v18, %s835_s9  ;;  %352 = vst [vmem:[#allocation3 + $0x28] sm:$0xf] %v324_v19  ;;  %329 = vrot.lane.b32.xlu1 %v324_v19, %s835_s9 }
 0x138   : > { %v269_v21 = vpop.permute.xlu1 %268 }
 0x139   : > { %v369_v20 = vpop.permute.xlu0 %368  ;;  %v274_v22 = vsel %vm272_vm7, %v269_v21, %v271_v13  ;;  %v273_v23 = vsel %vm272_vm7, %v267_v17, %v269_v21 }
 0x13a   : > { %279 = vrot.lane.b32.xlu1 %v274_v22, %s835_s9  ;;  %277 = vrot.lane.b32.xlu0 %v273_v23, %s835_s9  ;;  %v373_v29 = vsel %vm372_vm8, %v966_v14, %v369_v20 }
 0x13c   : > { %v371_v25 = vpop.permute.xlu1 %370 }
 0x13d   : > { %v302_v24 = vpop.permute.xlu0 %301  ;;  %v374_v30 = vsel %vm372_vm8, %v369_v20, %v371_v25 }
 0x13e   : > { %v304_v26 = vsel %vm272_vm7, %v267_v17, %v302_v24  ;;  %288 = vrot.lane.b32.xlu1 %v274_v22, %s833_s7  ;;  %286 = vrot.lane.b32.xlu0 %v273_v23, %s833_s7 }
 0x13f   : > { %308 = vst [vmem:[#allocation3 + $0x8] sm:$0xf0] %v304_v26 }
 0x140   : > { %v300_v27 = vpop.permute.xlu1 %299 }
 0x141   : > { %v303_v28 = vsel %vm272_vm7, %v300_v27, %v267_v17 }
 0x142   : > { %307 = vst [vmem:[#allocation3] sm:$0xf0] %v303_v28  ;;  %337 = vrot.lane.b32.xlu1 %v324_v19, %s833_s7  ;;  %335 = vrot.lane.b32.xlu0 %v323_v18, %s833_s7 }
 0x146   : > { %377 = vrot.lane.b32.xlu0 %v373_v29, %s835_s9  ;;  %379 = vrot.lane.b32.xlu1 %v374_v30, %s835_s9 }
 0x14a   : > { %399 = vrot.lane.b32.xlu0 %v396_v31, %s834_s8  ;;  %397 = vrot.lane.b32.xlu1 %v297_v11, %s834_s8 }
 0x14e   : > { %385 = vrot.lane.b32.xlu0 %v373_v29, %s833_s7  ;;  %387 = vrot.lane.b32.xlu1 %v374_v30, %s833_s7  ;;  %s763_s7 = sshll.u32 %s837_s6, 4  ;;  %s764_s7 = int_to_ptr.vmem [resolvable:$false] %s763_s7 }
 0x14f   : > { %s765_s8 = scalar_lea.vmem %s764_s7, 1024  ;;  %p766_p2 = scmp.lt.s32.totalorder %s1063_s23, %s764_s7 }
 0x150   : > { %p767_p3 = scmp.lt.s32.totalorder %s765_s8, %s759_s5 }
 0x152   : > { %425 = vperm.xlu0 %725, %v421_v33   ;;  %430 = vperm.xlu1 %726, %v422_v34   ;;  %p768_p4 = por %p767_p3, %p766_p2 }
 0x154   : > { %p769_p7 = pnand %p768_p4, %p762_p12 }
 0x1a8   : > { %v328_v42 = vpop.permute.xlu0 %327  ;;  %v330_v43 = vpop.permute.xlu1 %329 }
 0x1a9   : > { %v331_v44 = vsel %vm281_vm9, %v328_v42, %v330_v43  ;;  %v332_v45 = vsel %vm281_vm9, %v330_v43, %v328_v42  ;;  %v529_v43 = vstv %s524_s15 }
 0x1aa   : > { %v333_v46 = vsel %vm990_vm10, %v332_v45, 0.0  ;;  %v334_v47 = vsel %vm994_vm11, %v331_v44, 0.0 }
 0x1ab   : > { %v345_v48 = vrot.slane %v333_v46, 4  ;;  %v346_v49 = vrot.slane %v334_v47, 4 }
 0x1ac   : > { %v278_v50 = vpop.permute.xlu0 %277  ;;  %v280_v51 = vpop.permute.xlu1 %279 }
 0x1ad   : > { %349 = vst [vmem:[#allocation3 + $0x10] sm:$0xf0] %v345_v48  ;;  %350 = vst [vmem:[#allocation3 + $0x18] sm:$0xf0] %v346_v49  ;;  %v282_v52 = vsel %vm281_vm9, %v278_v50, %v280_v51  ;;  %v283_v53 = vsel %vm281_vm9, %v280_v51, %v278_v50 }
 0x1ae   : > { %v284_v54 = vsel %vm990_vm10, %v283_v53, 0.0  ;;  %v285_v55 = vsel %vm994_vm11, %v282_v52, 0.0 }
 0x1af   : > { %295 = vst [vmem:[#allocation3] sm:$0xf] %v284_v54  ;;  %296 = vst [vmem:[#allocation3 + $0x8] sm:$0xf] %v285_v55 }
 0x1b0   : > { %v287_v58 = vpop.permute.xlu0 %286  ;;  %v289_v59 = vpop.permute.xlu1 %288 }
 0x1b1   : > { %v291_v60 = vsel %vm290_vm12, %v287_v58, %v289_v59  ;;  %v292_v61 = vsel %vm290_vm12, %v289_v59, %v287_v58 }
 0x1b2   : > { %v293_v62 = vsel %vm1015_vm13, %v291_v60, 0.0  ;;  %v294_v63 = vsel %vm1019_vm14, %v292_v61, 0.0 }
 0x1b3   : > { %309 = vst [vmem:[#allocation3 + $0x10] sm:$0xf] %v293_v62  ;;  %310 = vst [vmem:[#allocation3 + $0x18] sm:$0xf] %v294_v63 }
 0x1b4   : > { %v336_v0 = vpop.permute.xlu0 %335  ;;  %v338_v1 = vpop.permute.xlu1 %337 }
 0x1b5   : > { %v339_v2 = vsel %vm290_vm12, %v336_v0, %v338_v1  ;;  %v340_v3 = vsel %vm290_vm12, %v338_v1, %v336_v0 }
 0x1b6   : > { %v341_v4 = vsel %vm1015_vm13, %v339_v2, 0.0  ;;  %v342_v5 = vsel %vm1019_vm14, %v340_v3, 0.0  ;;  %v412_v12 = vld [vmem:[#allocation3 + $0x8] sm:$0xff]  ;;  %v411_v17 = vld [vmem:[#allocation3] sm:$0xff] }
 0x1b7   : > { %v355_v6 = vrot.slane %v341_v4, 4  ;;  %v356_v7 = vrot.slane %v342_v5, 4 }
 0x1b8   : > { %v378_v8 = vpop.permute.xlu0 %377  ;;  %v380_v9 = vpop.permute.xlu1 %379 }
 0x1b9   : > { %359 = vst [vmem:[#allocation3 + $0x20] sm:$0xf0] %v355_v6  ;;  %360 = vst [vmem:[#allocation3 + $0x28] sm:$0xf0] %v356_v7  ;;  %v381_v10 = vsel %vm281_vm9, %v378_v8, %v380_v9  ;;  %v382_v11 = vsel %vm281_vm9, %v380_v9, %v378_v8 }
 0x1ba   : > { %v383_v13 = vsel %vm990_vm10, %v382_v11, 0.0  ;;  %v384_v15 = vsel %vm994_vm11, %v381_v10, 0.0  ;;  %v414_v16 = vld [vmem:[#allocation3 + $0x18] sm:$0xff]  ;;  %v413_v18 = vld [vmem:[#allocation3 + $0x10] sm:$0xff] }
 0x1bb   : > { %393 = vst [vmem:[#allocation3 + $0x30] sm:$0xf] %v383_v13  ;;  %394 = vst [vmem:[#allocation3 + $0x38] sm:$0xf] %v384_v15  ;;  %v650_v19 = vpack.c.bf16 %v414_v16, %v412_v12  ;;  %v652_v20 = vpack.c.bf16 %v413_v18, %v411_v17 }
 0x1bc   : > { %v400_v21 = vpop.permute.xlu0 %399  ;;  %v398_v22 = vpop.permute.xlu1 %397 }
 0x1bd   : > { %v402_v23 = vsel %vm372_vm8, %v966_v14, %v400_v21  ;;  %v401_v24 = vsel %vm372_vm8, %v398_v22, %v966_v14  ;;  %651 = vmatprep.subr.bf16.mxu0 %v650_v19  ;;  %658 = vmatprep.subr.bf16.mxu1 %v650_v19 }
 0x1be   : > { %406 = vst [vmem:[#allocation3 + $0x38] sm:$0xf0] %v402_v23  ;;  %405 = vst [vmem:[#allocation3 + $0x30] sm:$0xf0] %v401_v24  ;;  %653 = vmatpush1.bf16.msra.mxu0 %v652_v20  ;;  %661 = vmatpush1.bf16.msra.mxu1 %v652_v20 }
 0x1c0   : > { %v386_v25 = vpop.permute.xlu0 %385  ;;  %v388_v26 = vpop.permute.xlu1 %387  ;;  %v416_v30 = vld [vmem:[#allocation3 + $0x28] sm:$0xff]  ;;  %v415_v32 = vld [vmem:[#allocation3 + $0x20] sm:$0xff] }
 0x1c1   : > { %v389_v27 = vsel %vm290_vm12, %v386_v25, %v388_v26  ;;  %v390_v28 = vsel %vm290_vm12, %v388_v26, %v386_v25 }
 0x1c2   : > { %v391_v29 = vsel %vm1015_vm13, %v389_v27, 0.0  ;;  %v392_v14 = vsel %vm1019_vm14, %v390_v28, 0.0 }
 0x1c3   : > { %407 = vst [vmem:[#allocation3 + $0x40] sm:$0xf] %v391_v29  ;;  %408 = vst [vmem:[#allocation3 + $0x48] sm:$0xf] %v392_v14 }
 0x1c5   : > { %v418_v31 = vld [vmem:[#allocation3 + $0x38] sm:$0xff]  ;;  %v417_v33 = vld [vmem:[#allocation3 + $0x30] sm:$0xff] }
 0x1c6   : > { %v654_v34 = vpack.c.bf16 %v418_v31, %v416_v30  ;;  %v656_v35 = vpack.c.bf16 %v417_v33, %v415_v32 }
 0x1c8   : > { %655 = vmatprep.subr.bf16.mxu0 %v654_v34  ;;  %659 = vmatprep.subr.bf16.mxu1 %v654_v34 }
 0x1c9   : > { %657 = vmatpush1.bf16.msra.mxu0 %v656_v35  ;;  %662 = vmatpush1.bf16.msra.mxu1 %v656_v35 }
 0x1ca   : > { %v420_v36 = vld [vmem:[#allocation3 + $0x48] sm:$0xf]  ;;  %v419_v39 = vld [vmem:[#allocation3 + $0x40] sm:$0xf] }
 0x1cb   : > { %639 = vmatprep.subr.msk.mxu0 %vm440_vm15, %v420_v36  ;;  %660 = vmatprep.subr.msk.mxu1 %vm440_vm15, %v420_v36 }
 0x1cd   : > { %640 = vmatpush1.msk.msra.mxu0 %vm440_vm15, %v419_v39  ;;  %663 = vmatpush1.msk.msra.mxu1 %vm440_vm15, %v419_v39 }
 0x1ce   : > { %641 = vmatmul.mubr.msk.f32.vlgmr.msra.gmra.mrb[0].mxu0 %vm433_vm0, %v409_v37  ;;  %642 = vmatmul.mubr.msk.f32.vlgmr.msra.gmra.mrb[0].mxu1 %vm433_vm0, %v410_v38 }
 0x1d1   : > { %v426_v40 = vpop.permute.xlu0 %425  ;;  %v431_v41 = vpop.permute.xlu1 %430 }
 0x2a1   : > { %v513_v42 = vpop.f32.mrb[0].mxu0  ;;  %v519_v44 = vpop.f32.mrb[0].mxu1 }
 0x2a2   : > { %v514_v45 = vadd.f32 %v513_v42, %v426_v40  ;;  %v520_v46 = vadd.f32 %v519_v44, %v431_v41  ;;  %v515_v47 = vpop.f32.mrb[1].mxu0  ;;  %v521_v48 = vpop.f32.mrb[1].mxu1 }
 0x2a3   : > { %v516_v49 = vadd.f32 %v515_v47, %v426_v40  ;;  %v522_v50 = vadd.f32 %v521_v48, %v431_v41 }
 0x2a4   : > { %vm525_vm1 = vcmp.ge.f32.partialorder %v514_v45, 0.0  ;;  %v530_v51 = vmul.f32 %v529_v43, %v514_v45  ;;  %vm527_vm2 = vcmp.ge.f32.partialorder %v520_v46, 0.0  ;;  %v532_v52 = vmul.f32 %v529_v43, %v520_v46 }
 0x2a5   : > { %vm526_vm3 = vcmp.ge.f32.partialorder %v516_v49, 0.0  ;;  %v531_v53 = vmul.f32 %v529_v43, %v516_v49  ;;  %vm528_vm4 = vcmp.ge.f32.partialorder %v522_v50, 0.0  ;;  %v533_v54 = vmul.f32 %v529_v43, %v522_v50 }
 0x2a6   : > { %v534_v55 = vsel %vm525_vm1, %v514_v45, %v530_v51  ;;  %v536_v56 = vsel %vm527_vm2, %v520_v46, %v532_v52 }
 0x2a7   : > { %538 = vst [vmem:[%s206_s21] sm:$0xff] %v534_v55  ;;  %540 = vst [vmem:[%s206_s21 + $0x10] sm:$0xff] %v536_v56  ;;  %v535_v57 = vsel %vm526_vm3, %v516_v49, %v531_v53  ;;  %v537_v58 = vsel %vm528_vm4, %v522_v50, %v533_v54 }
 0x2a8   : > { %539 = vst [vmem:[%s206_s21 + $0x8] sm:$0xff] %v535_v57  ;;  %541 = vst [vmem:[%s206_s21 + $0x18] sm:$0xff] %v537_v58 }
 0x2a9   : > { %772 = shalt.err (!%p769_p7)
}
 0x2aa   : > { %s773_s9 = scalar_lea.hbm %s1068_s3, 512  ;;  %s777_s12 = scalar_lea.hbm %s1117_s4, 1024 }
 0x2ab   : > { %p774_p8 = scmp.ne.s32.totalorder %s1068_s3, %s773_s9  ;;  %p778_p1 = scmp.lt.u32.totalorder %s1068_s3, %s1117_s4 }
 0x2ac   : > { %p779_p0 = scmp.lt.u32.totalorder %s777_s12, %s773_s9  ;;  %p781_p6 = scmp.lt.u32.totalorder %s773_s9, %s1068_s3 }
 0x2ad   : > { %p775_p11 = pnand %p774_p8, %p1136_p9 }
 0x2ae   : > { %p780_p5 = por %p779_p0, %p778_p1 }
 0x2af   : > { %p776_p13 = pneg %p775_p11 }
 0x2b0   : > { %p782_p10 = por %p781_p6, %p780_p5 }
 0x2b2   : > { %p783_p12 = pnand %p782_p10, %p776_p13 }
 0x2b4   : > { %786 = shalt.err (!%p783_p12)
}
 0x2b5   : > { %s838_s15 = smov 256   ;;  %s839_s16 = smov 16  }
 0x2b6   : > { %668 = dma.vmem_to_hbm [thread:$0]  (%p1136_p9), %s1063_s23, 512, %s1068_s3, %s1072_s30, %s838_s15, %s838_s15, %s839_s16  }
 0x2b7 PF: > { %p680_p2 = scmp.ge.s32.totalorder %s825_s20, 2  ;;  %s571_s21 = sand.u32 1, %s813_s17  }
 0x2b8   : > { %p1137_p3 = scmp.ne.s32.totalorder %s1122_s27, 0  ;;  %s572_s24 = scalar_lea.sflag [#allocation7], %s571_s21 }
 0x2ba   : > { %p675_p4 = pnand %p680_p2, %p1137_p3 }
 0x2bc   : > { %808 = dma.done.wait (!%p675_p4), %s572_s24, 512  }
 0x2bd   : > { %810 = vsyncadd (!%p675_p4), %s572_s24, 4294966784  ;;  %p16_p7 = scmp.ge.s32.totalorder %s893_s22, 4   ;;  %s1138_s17 = smov %s817_s18 }
 0x2be   : > { %s1139_s18 = smov %s821_s19  ;;  %s1140_s19 = smov %s904_s25 }
 0x2bf   : > { %s1141_s20 = smov %s893_s22  ;;  %18 = sbr.rel (!%p16_p7) target bundleno = 6 (0x6), region = 76 }
 0x2c6   :  { %577 = vsyncpa [#allocation6], 1 }
 0x2c7   :  { %579 = vsyncpa [#allocation6 + $0x1], 1 }
 0x2c8   :  { %580 = vsyncpa [#allocation7], 1 }
 0x2c9   :  { %582 = vsyncpa [#allocation7 + $0x1], 1 }

</bundles_post_ra>
